<compile_context>
chip_gen: v7x
topology: tpu7x:2x2x1
jax: 0.10.0
libtpu: 0.0.40
codegen_flags: <defaults>
</compile_context>

<pallas_src>
import math
import jax
import jax.numpy as jnp
from jax.experimental import pallas as pl
from jax.experimental.pallas import tpu as pltpu

BN_EPS = 1e-5
_VMEM_LIMIT_BYTES = 32 * 1024 * 1024    # safe on v5e/v6e (128 MiB phys) and v7x (64 MiB)
_TILE_BUDGET_BYTES = 12 * 1024 * 1024   # double-buffered working-set target per step
_TILE_TARGET = 2048                     # lanes per tile (512-2048 sweet spot)


# ----------------------------- Pallas kernels ------------------------------ #

def _conv_stats_kernel(x_ref, w_ref, y_ref, sum_ref, ssq_ref):
    """Phase 1: y = W @ x tile, plus global per-channel sum / sum-of-squares.

    x_ref:   (1, K, T)      input pixels (lane dim = pixels)
    w_ref:   (Cout, K)      conv weight (resident: constant index_map)
    y_ref:   (1, Cout, T)   pre-BN conv output, f32
    sum_ref: (Cout, 1)      grid-resident accumulator (sum of y per channel)
    ssq_ref: (Cout, 1)      grid-resident accumulator (sum of y^2 per channel)
    """
    # Feed operands at their native dtype; MXU accumulates in f32.
    y = jnp.dot(w_ref[...], x_ref[0], preferred_element_type=jnp.float32)  # (Cout, T)
    y_ref[0] = y.astype(y_ref.dtype)

    @pl.when(jnp.logical_and(pl.program_id(0) == 0, pl.program_id(1) == 0))
    def _init():
        sum_ref[...] = jnp.zeros_like(sum_ref)
        ssq_ref[...] = jnp.zeros_like(ssq_ref)

    sum_ref[...] += jnp.sum(y, axis=1, keepdims=True)
    ssq_ref[...] += jnp.sum(y * y, axis=1, keepdims=True)


def _bn_apply_kernel(y_ref, scale_ref, shift_ref, o_ref):
    """Phase 2: out = y * scale + shift  (BN folded into one FMA per element)."""
    o_ref[0] = (y_ref[0] * scale_ref[...] + shift_ref[...]).astype(o_ref.dtype)


# ------------------------------ glue / wrapper ------------------------------ #

def _pick_hw_tile(hw, kdim, c_out):
    """Largest multiple-of-128 divisor of hw that is <= target and fits VMEM budget."""
    def fits(t):
        # double-buffered x tile + y tile (f32) + resident weight slab
        return 4 * (2 * t * (kdim + c_out) + c_out * kdim) <= _TILE_BUDGET_BYTES

    best = None
    t = 128
    while t <= min(hw, _TILE_TARGET):
        if hw % t == 0 and fits(t):
            best = t
        t += 128
    return best if best is not None else hw  # full-extent block is always legal


def _im2col_channel_major(x, k):
    """(N, C, H, W) -> (N, C*k*k, H*W), feature order (C, kh, kw), 'same' padding."""
    n, c, h, w = x.shape
    pad = (k - 1) // 2
    xp = jnp.pad(x, ((0, 0), (0, 0), (pad, pad), (pad, pad)))
    patches = [xp[:, :, dh:dh + h, dw:dw + w] for dh in range(k) for dw in range(k)]
    p = jnp.stack(patches, axis=2)                     # (N, C, k*k, H, W)
    return p.reshape(n, c * k * k, h * w)


def connector_conv_bn_single(x_nchw, weight, gamma, beta, kernel_size=1):
    """One connector: Conv2d(k, stride 1, same pad, no bias) + BatchNorm2d (batch stats)."""
    n, c_in, h, w = x_nchw.shape
    c_out = weight.shape[0]
    k = kernel_size
    hw = h * w

    if k == 1:
        x3d = x_nchw.reshape(n, c_in, hw)              # pure reshape, no data movement
        kdim = c_in
    else:
        # TODO(synk): for k>1, accumulate k*k shifted matmuls inside the kernel instead
        # of materializing the k^2 im2col expansion in HBM.
        x3d = _im2col_channel_major(x_nchw, k)
        kdim = c_in * k * k

    w2d = weight.reshape(c_out, kdim)

    hw_tile = _pick_hw_tile(hw, kdim, c_out)
    num_tiles = hw // hw_tile

    # ---- phase 1: conv-as-matmul + global per-channel stats accumulation ----
    y3d, ch_sum, ch_ssq = pl.pallas_call(
        _conv_stats_kernel,
        out_shape=(
            jax.ShapeDtypeStruct((n, c_out, hw), jnp.float32),
            jax.ShapeDtypeStruct((c_out, 1), jnp.float32),
            jax.ShapeDtypeStruct((c_out, 1), jnp.float32),
        ),
        grid=(n, num_tiles),
        in_specs=[
            pl.BlockSpec((1, kdim, hw_tile), lambda i, j: (i, 0, j)),
            pl.BlockSpec((c_out, kdim), lambda i, j: (0, 0)),
        ],
        out_specs=(
            pl.BlockSpec((1, c_out, hw_tile), lambda i, j: (i, 0, j)),
            pl.BlockSpec((c_out, 1), lambda i, j: (0, 0)),
            pl.BlockSpec((c_out, 1), lambda i, j: (0, 0)),
        ),
        compiler_params=pltpu.CompilerParams(
            dimension_semantics=("arbitrary", "arbitrary"),
            vmem_limit_bytes=_VMEM_LIMIT_BYTES),
    )(x3d, w2d)

    # ---- tiny per-channel math (done once, in plain JAX) ----
    m_total = float(n * hw)
    mean = ch_sum[:, 0] / m_total
    var = jnp.maximum(ch_ssq[:, 0] / m_total - mean * mean, 0.0)   # biased variance
    scale = gamma.astype(jnp.float32) * jax.lax.rsqrt(var + BN_EPS)
    shift = beta.astype(jnp.float32) - mean * scale
    scale2d = scale.reshape(c_out, 1)
    shift2d = shift.reshape(c_out, 1)

    # ---- phase 2: elementwise normalize (embarrassingly parallel) ----
    out3d = pl.pallas_call(
        _bn_apply_kernel,
        out_shape=jax.ShapeDtypeStruct((n, c_out, hw), x_nchw.dtype),
        grid=(n, num_tiles),
        in_specs=[
            pl.BlockSpec((1, c_out, hw_tile), lambda i, j: (i, 0, j)),
            pl.BlockSpec((c_out, 1), lambda i, j: (0, 0)),
            pl.BlockSpec((c_out, 1), lambda i, j: (0, 0)),
        ],
        out_specs=pl.BlockSpec((1, c_out, hw_tile), lambda i, j: (i, 0, j)),
        compiler_params=pltpu.CompilerParams(
            dimension_semantics=("parallel", "parallel"),
            vmem_limit_bytes=_VMEM_LIMIT_BYTES),
    )(y3d, scale2d, shift2d)

    return out3d.reshape(n, c_out, h, w)


def make_connector_params(key, s_channels, t_channels, kernel_size=1):
    """Deterministic init mirroring the PyTorch module's __init__."""
    params = []
    for s_ch, t_ch in zip(s_channels, t_channels):
        key, sub = jax.random.split(key)
        fan = kernel_size * kernel_size * t_ch
        wgt = jax.random.normal(sub, (t_ch, s_ch, kernel_size, kernel_size),
                                dtype=jnp.float32) * math.sqrt(2.0 / fan)
        gamma = jnp.ones((t_ch,), jnp.float32)
        beta = jnp.zeros((t_ch,), jnp.float32)
        params.append((wgt, gamma, beta))
    return params


def connector_conv_bn_forward(g_s, params, kernel_size=1):
    return [connector_conv_bn_single(x, w, g, b, kernel_size)
            for x, (w, g, b) in zip(g_s, params)]


def _reference_forward(g_s, params, kernel_size=1):
    """Pure-JAX reference (lax.conv + batch-stat BN) for sanity checking."""
    outs = []
    pad = (kernel_size - 1) // 2
    for x, (w, gamma, beta) in zip(g_s, params):
        y = jax.lax.conv_general_dilated(
            x, w, window_strides=(1, 1), padding=((pad, pad), (pad, pad)),
            dimension_numbers=("NCHW", "OIHW", "NCHW"))
        mean = jnp.mean(y, axis=(0, 2, 3), keepdims=True)
        var = jnp.mean((y - mean) ** 2, axis=(0, 2, 3), keepdims=True)
        yhat = (y - mean) * jax.lax.rsqrt(var + BN_EPS)
        outs.append(yhat * gamma.reshape(1, -1, 1, 1) + beta.reshape(1, -1, 1, 1))
    return outs


if __name__ == "__main__":
    key = jax.random.PRNGKey(0)

    # small synthetic feature pyramid (NCHW), two stages
    s_channels = [4, 8]
    t_channels = [8, 16]
    kernel_size = 1  # module default

    key, k1, k2 = jax.random.split(key, 3)
    g_s = [
        jax.random.normal(k1, (2, s_channels[0], 16, 16), dtype=jnp.float32),
        jax.random.normal(k2, (2, s_channels[1], 8, 8), dtype=jnp.float32),
    ]

    params = make_connector_params(key, s_channels, t_channels, kernel_size)

    outs = connector_conv_bn_forward(g_s, params, kernel_size)
    outs = [jax.block_until_ready(o) for o in outs]

    refs = _reference_forward(g_s, params, kernel_size)
    for o, r in zip(outs, refs):
        assert o.shape == r.shape
        assert jnp.max(jnp.abs(o - r)) < 1e-3, "mismatch vs reference"

    print("KERNEL_OK")
</pallas_src>

<mosaic_0001>
module attributes {stable_mosaic.version = 11 : i64} {
  func.func @_conv_stats_kernel(%arg0: i32, %arg1: i32, %arg2: memref<1x4x256xf32, #tpu.memory_space<vmem>>, %arg3: memref<8x4xf32, #tpu.memory_space<vmem>>, %arg4: memref<1x8x256xf32, #tpu.memory_space<vmem>>, %arg5: memref<8x1xf32, #tpu.memory_space<vmem>>, %arg6: memref<8x1xf32, #tpu.memory_space<vmem>>) attributes {dimension_semantics = [#tpu.dimension_semantics<arbitrary>, #tpu.dimension_semantics<arbitrary>], iteration_bounds = array<i64: 2, 1>, scalar_prefetch = 0 : i64, scratch_operands = 0 : i64, tpu.core_type = #tpu.core_type<tc>, window_params = [{transform_indices = @transform_0, window_bounds = array<i64: 1, 4, 256>}, {pipeline_mode = #tpu.pipeline_mode<synchronous>, transform_indices = @transform_1, window_bounds = array<i64: 8, 4>}, {transform_indices = @transform_2, window_bounds = array<i64: 1, 8, 256>}, {pipeline_mode = #tpu.pipeline_mode<synchronous>, transform_indices = @transform_3, window_bounds = array<i64: 8, 1>}, {pipeline_mode = #tpu.pipeline_mode<synchronous>, transform_indices = @transform_4, window_bounds = array<i64: 8, 1>}]} {
    %c0 = arith.constant 0 : index
    %c0_0 = arith.constant 0 : index
    %0 = vector.load %arg3[%c0, %c0_0] : memref<8x4xf32, #tpu.memory_space<vmem>>, vector<8x4xf32>
    %c0_1 = arith.constant 0 : index
    %c0_2 = arith.constant 0 : index
    %c0_3 = arith.constant 0 : index
    %1 = vector.load %arg2[%c0_1, %c0_2, %c0_3] : memref<1x4x256xf32, #tpu.memory_space<vmem>>, vector<1x4x256xf32>
    %2 = vector.shape_cast %1 : vector<1x4x256xf32> to vector<4x256xf32>
    %cst = arith.constant dense<0.000000e+00> : vector<8x256xf32>
    %3 = tpu.matmul %0, %2, %cst {dimension_numbers = #tpu.dot_dimension_numbers<[1], [0], [0], [1], [0, 0, 1, 1], [], []>} : vector<8x4xf32>, vector<4x256xf32>, vector<8x256xf32> -> vector<8x256xf32>
    %c0_4 = arith.constant 0 : index
    %c0_5 = arith.constant 0 : index
    %c0_6 = arith.constant 0 : index
    %4 = vector.load %arg4[%c0_4, %c0_5, %c0_6] : memref<1x8x256xf32, #tpu.memory_space<vmem>>, vector<1x8x256xf32>
    %5 = vector.shape_cast %4 : vector<1x8x256xf32> to vector<8x256xf32>
    %6 = vector.shape_cast %3 : vector<8x256xf32> to vector<1x8x256xf32>
    tpu.vector_store %arg4[%c0_4, %c0_5, %c0_6], %6 {strides = array<i32>} : memref<1x8x256xf32, #tpu.memory_space<vmem>>, vector<1x8x256xf32>,
    %c0_i32 = arith.constant 0 : i32
    %7 = arith.cmpi eq, %arg0, %c0_i32 : i32
    %c0_i32_7 = arith.constant 0 : i32
    %8 = arith.cmpi eq, %arg1, %c0_i32_7 : i32
    %9 = arith.andi %7, %8 : i1
    %10 = arith.extui %9 : i1 to i32
    %c0_i32_8 = arith.constant 0 : i32
    %11 = arith.cmpi ne, %10, %c0_i32_8 : i32
    scf.if %11 {
      %cst_19 = arith.constant 0.000000e+00 : f32
      %23 = vector.broadcast %cst_19 : f32 to vector<8x1xf32>
      %c0_20 = arith.constant 0 : index
      %c0_21 = arith.constant 0 : index
      %24 = vector.load %arg5[%c0_20, %c0_21] : memref<8x1xf32, #tpu.memory_space<vmem>>, vector<8x1xf32>
      tpu.vector_store %arg5[%c0_20, %c0_21], %23 {strides = array<i32>} : memref<8x1xf32, #tpu.memory_space<vmem>>, vector<8x1xf32>,
      %cst_22 = arith.constant 0.000000e+00 : f32
      %25 = vector.broadcast %cst_22 : f32 to vector<8x1xf32>
      %c0_23 = arith.constant 0 : index
      %c0_24 = arith.constant 0 : index
      %26 = vector.load %arg6[%c0_23, %c0_24] : memref<8x1xf32, #tpu.memory_space<vmem>>, vector<8x1xf32>
      tpu.vector_store %arg6[%c0_23, %c0_24], %25 {strides = array<i32>} : memref<8x1xf32, #tpu.memory_space<vmem>>, vector<8x1xf32>,
    } else {
    }
    %c0_9 = arith.constant 0 : index
    %c0_10 = arith.constant 0 : index
    %12 = vector.load %arg5[%c0_9, %c0_10] : memref<8x1xf32, #tpu.memory_space<vmem>>, vector<8x1xf32>
    %cst_11 = arith.constant dense<0.000000e+00> : vector<8xf32>
    %13 = vector.multi_reduction <add>, %3, %cst_11 [1] : vector<8x256xf32> to vector<8xf32>
    %14 = vector.shape_cast %13 : vector<8xf32> to vector<8x1xf32>
    %15 = arith.addf %12, %14 : vector<8x1xf32>
    %c0_12 = arith.constant 0 : index
    %c0_13 = arith.constant 0 : index
    %16 = vector.load %arg5[%c0_12, %c0_13] : memref<8x1xf32, #tpu.memory_space<vmem>>, vector<8x1xf32>
    tpu.vector_store %arg5[%c0_12, %c0_13], %15 {strides = array<i32>} : memref<8x1xf32, #tpu.memory_space<vmem>>, vector<8x1xf32>,
    %c0_14 = arith.constant 0 : index
    %c0_15 = arith.constant 0 : index
    %17 = vector.load %arg6[%c0_14, %c0_15] : memref<8x1xf32, #tpu.memory_space<vmem>>, vector<8x1xf32>
    %18 = arith.mulf %3, %3 : vector<8x256xf32>
    %cst_16 = arith.constant dense<0.000000e+00> : vector<8xf32>
    %19 = vector.multi_reduction <add>, %18, %cst_16 [1] : vector<8x256xf32> to vector<8xf32>
    %20 = vector.shape_cast %19 : vector<8xf32> to vector<8x1xf32>
    %21 = arith.addf %17, %20 : vector<8x1xf32>
    %c0_17 = arith.constant 0 : index
    %c0_18 = arith.constant 0 : index
    %22 = vector.load %arg6[%c0_17, %c0_18] : memref<8x1xf32, #tpu.memory_space<vmem>>, vector<8x1xf32>
    tpu.vector_store %arg6[%c0_17, %c0_18], %21 {strides = array<i32>} : memref<8x1xf32, #tpu.memory_space<vmem>>, vector<8x1xf32>,
    return
  }
  func.func @transform_0(%arg0: i32, %arg1: i32) -> (i32, i32, i32) {
    %c0_i32 = arith.constant 0 : i32
    %c0_i32_0 = arith.constant 0 : i32
    return %arg0, %c0_i32, %arg1 : i32, i32, i32
  }
  func.func @transform_1(%arg0: i32, %arg1: i32) -> (i32, i32) {
    %c0_i32 = arith.constant 0 : i32
    %c0_i32_0 = arith.constant 0 : i32
    %c0_i32_1 = arith.constant 0 : i32
    return %c0_i32, %c0_i32_0 : i32, i32
  }
  func.func @transform_2(%arg0: i32, %arg1: i32) -> (i32, i32, i32) {
    %c0_i32 = arith.constant 0 : i32
    %c0_i32_0 = arith.constant 0 : i32
    return %arg0, %c0_i32, %arg1 : i32, i32, i32
  }
  func.func @transform_3(%arg0: i32, %arg1: i32) -> (i32, i32) {
    %c0_i32 = arith.constant 0 : i32
    %c0_i32_0 = arith.constant 0 : i32
    %c0_i32_1 = arith.constant 0 : i32
    return %c0_i32, %c0_i32_0 : i32, i32
  }
  func.func @transform_4(%arg0: i32, %arg1: i32) -> (i32, i32) {
    %c0_i32 = arith.constant 0 : i32
    %c0_i32_0 = arith.constant 0 : i32
    %c0_i32_1 = arith.constant 0 : i32
    return %c0_i32, %c0_i32_0 : i32, i32
  }
}

</mosaic_0001>

<bundles_post_ra>
// kernel: tpu_custom_call.1
= control target key start
LH: loop header
LB: loop body
LE: loop exit
PB: predicated region body
PF: predicated region fallthrough
CT: control target
= control target key end

     0   :  { %10 = vsyncpa [#allocation3], 0  ;;  %s871_s0 = inlined_call_operand.hbm [shape: f32[2,4,256], index: 0, kind: input, shape index: {}]   ;;  %s872_s1 = inlined_call_operand.vmem [shape: f32[8,4], index: 1, kind: input, shape index: {}]   ;;  %s873_s2 = inlined_call_operand.hbm [shape: f32[2,8,256], index: 2, kind: output, shape index: {0}]   ;;  %s874_s3 = inlined_call_operand.vmem [shape: f32[8,1], index: 3, kind: output, shape index: {1}]   ;;  %s875_s4 = inlined_call_operand.vmem [shape: f32[8,1], index: 4, kind: output, shape index: {2}]  }
   0x1   :  { %12 = vsyncpa [#allocation3 + $0x1], 0 }
   0x2   :  { %13 = vsyncpa [#allocation4], 0 }
   0x3   :  { %15 = vsyncpa [#allocation4 + $0x1], 0  ;;  %s682_s15 = smov 0   ;;  %s684_s16 = smov 0  }
   0x4   :  { %s686_s17 = smov 0   ;;  %s688_s18 = smov 0  }
   0x5   :  { %s690_s19 = smov 0   ;;  %s692_s20 = smov 0  }
   0x6 LB: > { %s452_s21 = sadd.s32 4294967295, %s651_s20   ;;  %s453_s22 = sadd.s32 4294967294, %s651_s20   ;;  %s651_s20 = sphi %s692_s20, %s21_s20   ;;  %s647_s19 = sphi %s690_s19, %s891_s19   ;;  %s643_s18 = sphi %s688_s18, %s890_s18   ;;  %s639_s17 = sphi %s686_s17, %s889_s17   ;;  %s635_s16 = sphi %s684_s16, %s888_s16   ;;  %s631_s15 = sphi %s682_s15, %s887_s15  }
   0x7   : > { %s33_s23 = sadd.s32 1, %s647_s19  ;;  %s42_s24 = sadd.s32 1, %s639_s17 }
   0x8   : > { %p35_p0 = scmp.ge.s32.totalorder %s33_s23, 2  ;;  %p49_p1 = scmp.ne.s32.totalorder %s639_s17, %s635_s16 }
   0x9   : > { %p50_p2 = scmp.eq.s32.totalorder %s651_s20, 0  ;;  %p55_p3 = scmp.ne.s32.totalorder %s635_s16, %s631_s15 }
   0xa   : > { %s893_s23 = smov (%p35_p0, %s33_s23), 0  ;;  %p56_p5 = scmp.eq.s32.totalorder %s452_s21, 0 }
   0xb   : > { %p723_p4 = por %p50_p2, %p49_p1  ;;  %s37_s26 = ssub.s32 %s647_s19, %s893_s23 }
   0xc   : > { %p102_p6 = scmp.eq.s32.totalorder %s452_s21, 1  ;;  %p40_p7 = scmp.eq.s32.totalorder %s37_s26, 0 }
   0xd   : > { %p729_p8 = por %p56_p5, %p55_p3  ;;  %p108_p10 = scmp.eq.s32.totalorder %s453_s22, 1 }
   0xe   : > { %p733_p9 = por %p102_p6, %p49_p1  ;;  %p486_p13 = scmp.lt.s32.totalorder %s651_s20, 2 }
   0xf   : > { %s738_s29 = scalar_select %p40_p7, %s639_s17, %s42_s24  }
  0x10   : > { %s879_s28 = scalar_select %p733_p9, 1, 0 }
  0x11   : > { %p740_p11 = por %p108_p10, %p55_p3  ;;  %s173_s5 = sand.u32 1, %s639_s17  }
  0x12   : > { %s456_s6 = sshll.u32 %s173_s5, 3  ;;  %s471_s7 = sshll.u32 %s647_s19, 7 }
  0x13   : > { %s880_s30 = scalar_select %p740_p11, 1, 0 }
  0x14   : > { %s751_s10 = scalar_lea.hbm %s871_s0, %s471_s7  ;;  %s177_s11 = scalar_lea.vmem [#allocation2], %s456_s6 }
  0x15   : > { %s187_s12 = sshll.u32 %s177_s11, 4  ;;  %p757_p0 = pnand %p486_p13, %p723_p4  ;;  %s753_s12 = int_to_ptr.vmem [resolvable:$true] %s187_s12 }
  0x16   : > { %s174_s14 = scalar_lea.sflag [#allocation3], %s173_s5  ;;  %s539_s21 = scalar_lea.hbm %s751_s10, 128 }
  0x17   : > { %p540_p3 = scmp.ne.s32.totalorder %s751_s10, %s539_s21  ;;  %p541_p5 = pneg %p757_p0 }
  0x18   : > { %s544_s25 = scalar_lea.hbm %s871_s0, 256  ;;  %p545_p4 = scmp.lt.u32.totalorder %s751_s10, %s871_s0 }
  0x19   : > { %p542_p6 = pnand %p541_p5, %p540_p3  ;;  %p546_p10 = scmp.lt.u32.totalorder %s544_s25, %s539_s21 }
  0x1a   : > { %p548_p12 = scmp.lt.u32.totalorder %s539_s21, %s751_s10 }
  0x1b   : > { %p543_p7 = pneg %p542_p6  ;;  %p547_p13 = por %p546_p10, %p545_p4 }
  0x1d   : > { %p549_p1 = por %p548_p12, %p547_p13 }
  0x1f   : > { %p550_p2 = pnand %p549_p1, %p543_p7 }
  0x21   : > { %553 = shalt.err (!%p550_p2)
}
  0x22   : > { %s554_s5 = scalar_lea.vmem %s753_s12, 128  ;;  %s653_s7 = smov [#allocation2]  }
  0x23   : > { %p555_p3 = scmp.ne.s32.totalorder %s753_s12, %s554_s5  ;;  %s559_s8 = sshll.u32 %s653_s7, 4  ;;  %s560_s8 = int_to_ptr.vmem [resolvable:$false] %s559_s8 }
  0x24   : > { %s561_s9 = scalar_lea.vmem %s560_s8, 256  ;;  %p562_p9 = scmp.lt.s32.totalorder %s753_s12, %s560_s8 }
  0x25   : > { %p557_p6 = pnand %p555_p3, %p541_p5  ;;  %p563_p4 = scmp.lt.s32.totalorder %s561_s9, %s554_s5 }
  0x27   : > { %p558_p11 = pneg %p557_p6  ;;  %p564_p10 = por %p563_p4, %p562_p9 }
  0x29   : > { %p565_p12 = pnand %p564_p10, %p558_p11 }
  0x2b   : > { %568 = shalt.err (!%p565_p12)
}
  0x2c   : > { %481 = dma.hbm_to_vmem [thread:$0]  (!%p757_p0), %s751_s10, 128, %s753_s12, %s174_s14  }
  0x2d   : > { %p882_p1 = scmp.lt.s32.totalorder %s651_s20, 3  ;;  %p883_p2 = scmp.ge.s32.totalorder %s651_s20, 1 }
  0x2f   : > { %p193_p5 = pnand %p883_p2, %p882_p1 }
  0x30   : > { %s793_s11 = sand.u32 (!%p193_p5), 1, %s635_s16  }
  0x31   : > { %196 = sbr.rel (%p193_p5) target bundleno = 427 (0x1ab), region = 28  ;;  %s460_s21 = sshll.u32 (!%p193_p5), %s793_s11, 3 }
  0x32   : > { %s199_s22 = scalar_lea.sflag (!%p193_p5), [#allocation3], %s793_s11  ;;  %s202_s24 = scalar_lea.vmem (!%p193_p5), [#allocation2], %s460_s21 }
  0x38   : > { %622 = dma.done.wait (%p729_p8), %s199_s22, 128  }
  0x39   : > { %624 = vsyncadd (%p729_p8), %s199_s22, 4294967168  ;;  %v654_v0 = vmov 0.0   ;;  %v230_v1 = vld [vmem:[%s202_s24] sm:$0xff]  ;;  %vm237_vm0 = vcmask 1043456   ;;  %vm233_vm1 = vcmask 31744   ;;  %p315_p9 = scmp.eq.s32.totalorder %s643_s18, 0 }
  0x3a   : > { %306 = vmatprep.mubr.f32.mxu0 %v654_v0  ;;  %v232_v2 = vcombine.high %v230_v1, %v230_v1  ;;  %v229_v3 = vld [vmem:[%s872_s1] sm:$0xff]  ;;  %s461_s13 = sshll.u32 %s793_s11, 4  ;;  %vm321_vm2 = vcmask (%p315_p9), 7168   ;;  %v655_v6 = vmov (%p315_p9), 0.0  }
  0x3b   : > { %s222_s27 = scalar_lea.vmem [#allocation5], %s461_s13  ;;  %322 = vst.msk [vmem:[%s874_s3] sm:$0xff] (%p315_p9), %vm321_vm2, %v655_v6  ;;  %323 = vst.msk [vmem:[%s875_s4] sm:$0xff] (%p315_p9), %vm321_vm2, %v655_v6 }
  0x3c   : > { %462 = vmatprep.subr.msk.mxu0 %vm237_vm0, %v232_v2 }
  0x3d   : > { %463 = vmatpush1.msk.msra.mxu0 %vm237_vm0, %v230_v1 }
  0x3e   : > { %464 = vmatmul.mubr.msk.f32.vlgmr.msra.gmra.mrb[0].mxu0 %vm233_vm1, %v229_v3 }
 0x10d   : > { %320 = sbr.rel (!%p315_p9) target bundleno = 276 (0x114), region = 36 }
 0x111   : > { %v308_v4 = vpop.f32.mrb[0].mxu0 }
 0x112   : > { %313 = vst [vmem:[%s222_s27] sm:$0xff] %v308_v4  ;;  %v310_v5 = vpop.f32.mrb[1].mxu0 }
 0x113   : > { %314 = vst [vmem:[%s222_s27 + $0x8] sm:$0xff] %v310_v5 }
 0x114 PF: > { %v325_v7 = vadd.f32 %v310_v5, %v308_v4  ;;  %v332_v8 = vmul.f32 %v308_v4, %v308_v4  ;;  %v333_v9 = vmul.f32 %v310_v5, %v310_v5  ;;  %s473_s5 = sshll.u32 %s643_s18, 8  ;;  %s356_s7 = sshll.u32 %s222_s27, 4  ;;  %s357_s7 = int_to_ptr.vmem [resolvable:$true] %s356_s7 }
 0x115   : > { %s816_s21 = scalar_lea.hbm %s873_s2, %s473_s5  ;;  %s340_s22 = scalar_lea.sflag [#allocation4], %s793_s11 }
 0x116   : > { %326 = vadd.xlane.f32.xlu0 %v325_v7  ;;  %v334_v10 = vadd.f32 %v333_v9, %v332_v8  ;;  %s569_s24 = scalar_lea.vmem %s357_s7, 256  ;;  %p884_p11 = scmp.ne.s32.totalorder %s879_s28, 0 }
 0x117   : > { %p570_p8 = scmp.ne.s32.totalorder %s357_s7, %s569_s24  ;;  %s656_s10 = smov [#allocation5]  }
 0x118   : > { %s573_s12 = sshll.u32 %s656_s10, 4  ;;  %s574_s12 = int_to_ptr.vmem [resolvable:$false] %s573_s12 }
 0x119   : > { %p571_p0 = pnand %p570_p8, %p884_p11  ;;  %s575_s13 = scalar_lea.vmem %s574_s12, 512 }
 0x11a   : > { %335 = vadd.xlane.f32.xlu0 %v334_v10  ;;  %p576_p13 = scmp.lt.s32.totalorder %s357_s7, %s574_s12  ;;  %p577_p3 = scmp.lt.s32.totalorder %s575_s13, %s569_s24 }
 0x11b   : > { %p572_p7 = pneg %p571_p0 }
 0x11c   : > { %p578_p6 = por %p577_p3, %p576_p13 }
 0x11e   : > { %p579_p4 = pnand %p578_p6, %p572_p7 }
 0x120   : > { %582 = shalt.err (!%p579_p4)
}
 0x121   : > { %s583_s18 = scalar_lea.hbm %s816_s21, 256  ;;  %s587_s14 = scalar_lea.hbm %s873_s2, 512 }
 0x122   : > { %p584_p10 = scmp.ne.s32.totalorder %s816_s21, %s583_s18  ;;  %p588_p2 = scmp.lt.u32.totalorder %s816_s21, %s873_s2 }
 0x123   : > { %p589_p5 = scmp.lt.u32.totalorder %s587_s14, %s583_s18  ;;  %p591_p8 = scmp.lt.u32.totalorder %s583_s18, %s816_s21 }
 0x124   : > { %p585_p12 = pnand %p584_p10, %p884_p11 }
 0x125   : > { %p590_p9 = por %p589_p5, %p588_p2 }
 0x126   : > { %p586_p1 = pneg %p585_p12 }
 0x127   : > { %p592_p0 = por %p591_p8, %p590_p9 }
 0x129   : > { %p593_p7 = pnand %p592_p0, %p586_p1 }
 0x12b   : > { %596 = shalt.err (!%p593_p7)
}
 0x12c   : > { %476 = dma.vmem_to_hbm [thread:$0]  (%p884_p11), %s357_s7, 256, %s816_s21, %s340_s22   ;;  %v324_v11 = vld [vmem:[%s874_s3] sm:$0xff]  ;;  %vm329_vm3 = vcmask 7168  }
 0x12d   : > { %v331_v14 = vld [vmem:[%s875_s4] sm:$0xff] }
 0x1a3   : > { %v327_v12 = vpop.xlane.xlu0 %326 }
 0x1a4   : > { %v328_v13 = vadd.f32 %v327_v12, %v324_v11 }
 0x1a6   : > { %330 = vst.msk [vmem:[%s874_s3] sm:$0xff] %vm329_vm3, %v328_v13 }
 0x1a7   : > { %v336_v15 = vpop.xlane.xlu0 %335 }
 0x1a8   : > { %v337_v16 = vadd.f32 %v336_v15, %v331_v14 }
 0x1aa   : > { %338 = vst.msk [vmem:[%s875_s4] sm:$0xff] %vm329_vm3, %v337_v16 }
 0x1ab PF: > { %s380_s7 = sand.u32 1, %s631_s15   ;;  %p885_p11 = scmp.ne.s32.totalorder %s880_s30, 0 }
 0x1ac   : > { %p886_p13 = scmp.ge.s32.totalorder %s651_s20, 2  ;;  %s381_s21 = scalar_lea.sflag [#allocation4], %s380_s7 }
 0x1ae   : > { %p483_p3 = pnand %p886_p13, %p885_p11 }
 0x1b0   : > { %626 = dma.done.wait (!%p483_p3), %s381_s21, 256  }
 0x1b1   : > { %628 = vsyncadd (!%p483_p3), %s381_s21, 4294967040  ;;  %s21_s20 = sadd.s32 1, %s651_s20   ;;  %s887_s15 = smov %s635_s16 }
 0x1b2   : > { %p18_p6 = scmp.ge.s32.totalorder %s21_s20, 4   ;;  %s888_s16 = smov %s639_s17 }
 0x1b3   : > { %s889_s17 = smov %s738_s29  ;;  %s890_s18 = smov %s647_s19 }
 0x1b4   : > { %s891_s19 = smov %s893_s23  ;;  %20 = sbr.rel (!%p18_p6) target bundleno = 6 (0x6), region = 93 }
 0x1bb   :  { %386 = vsyncpa [#allocation3], 1 }
 0x1bc   :  { %388 = vsyncpa [#allocation3 + $0x1], 1 }
 0x1bd   :  { %389 = vsyncpa [#allocation4], 1 }
 0x1be   :  { %391 = vsyncpa [#allocation4 + $0x1], 1 }

</bundles_post_ra>
